<compile_context>
chip_gen: v5e
topology: v5e:2x2
jax: 0.10.0
libtpu: 0.0.40
codegen_flags: <defaults>
</compile_context>

<pallas_src>
import functools

import jax
import jax.numpy as jnp
from jax.experimental import pallas as pl
from jax.experimental.pallas import tpu as pltpu


# ---------------------------------------------------------------------------
# Kernels
# ---------------------------------------------------------------------------

def _channel_attn_kernel(x_ref, w1t_ref, w2t_ref, out_ref):
    """Single-pass: squeeze (spatial mean) -> MLP -> sigmoid -> reweight."""
    x = x_ref[...]                                       # (TN, C, HW), resident in VMEM

    # Squeeze: global spatial average pool (HW is the lane axis), f32 accumulation.
    pooled = jnp.mean(x, axis=2, dtype=jnp.float32)      # (TN, C)

    # Excitation: Linear -> ReLU -> Linear -> Sigmoid (bias-free, spectral-normed).
    # Note: default dot precision is sufficient for the 1e-5 parity check here; set
    # precision=jax.lax.Precision.HIGHEST if strict f32 bit-parity is required.
    z = jnp.maximum(
        jnp.dot(pooled, w1t_ref[...], preferred_element_type=jnp.float32), 0.0)   # (TN, mip)
    a = jax.nn.sigmoid(
        jnp.dot(z, w2t_ref[...], preferred_element_type=jnp.float32))             # (TN, C)

    # Reweight: per-(n, c) scalar broadcast along the lane-dense spatial axis.
    out_ref[...] = (x * a.astype(x.dtype)[:, :, None]).astype(out_ref.dtype)


def _pool_mlp_kernel(x_ref, w1t_ref, w2t_ref, gain_ref, acc_ref, *, total_hw):
    """Two-pass fallback, pass 1: spatially tiled sum -> mean -> MLP -> gains."""
    h = pl.program_id(1)

    @pl.when(h == 0)
    def _():
        acc_ref[...] = jnp.zeros_like(acc_ref)

    x = x_ref[...]                                       # (1, C, THW)
    thw = x.shape[2]
    # Mask the padded spatial columns of the (possibly ragged) last tile.
    col = h * thw + jax.lax.broadcasted_iota(jnp.int32, x.shape, 2)
    xm = jnp.where(col < total_hw, x.astype(jnp.float32), 0.0)
    acc_ref[...] += jnp.sum(xm, axis=2)                  # (1, C)

    @pl.when(h == pl.num_programs(1) - 1)
    def _():
        pooled = acc_ref[...] * (1.0 / float(total_hw))  # (1, C)
        z = jnp.maximum(
            jnp.dot(pooled, w1t_ref[...], preferred_element_type=jnp.float32), 0.0)
        a = jax.nn.sigmoid(
            jnp.dot(z, w2t_ref[...], preferred_element_type=jnp.float32))         # (1, C)
        gain_ref[...] = a[:, None, :]                    # (1, 1, C)


def _reweight_kernel(x_ref, g_ref, o_ref):
    """Two-pass fallback, pass 2: spatially tiled broadcast-multiply."""
    x = x_ref[...]                                       # (1, C, THW)
    gain = g_ref[0]                                      # (1, C) f32
    o_ref[...] = (x * gain.astype(x.dtype)[:, :, None]).astype(o_ref.dtype)


# ---------------------------------------------------------------------------
# Wrapper
# ---------------------------------------------------------------------------

def _tpu_vmem_capacity_bytes():
    try:
        info = pltpu.get_tpu_info()
        cap = int(getattr(info, "vmem_capacity_bytes", 64 << 20))
        return cap if cap > 0 else (64 << 20)
    except Exception:
        return 64 << 20          # conservative (v7x-sized) fallback


def channel_attn_pallas(x, w1, w2, *, target_block_bytes=None, force_two_pass=False):
    """x: (N, C, H, W) f32 or bf16. w1: (mip, C). w2: (C, mip). Returns same shape/dtype as x."""
    N, C, H, W = x.shape
    mip = w1.shape[0]
    assert w1.shape == (mip, C) and w2.shape == (C, mip)

    HW = H * W
    itemsize = jnp.dtype(x.dtype).itemsize
    per_n_bytes = C * HW * itemsize

    # Generation-aware budgets (v5e/v6e: 128 MiB VMEM; v7x: 64 MiB).
    vmem_cap = _tpu_vmem_capacity_bytes()
    big_vmem = vmem_cap >= (96 << 20)
    vmem_budget = (100 << 20) if big_vmem else (40 << 20)
    if target_block_bytes is None:
        target_block_bytes = (8 << 20) if big_vmem else (4 << 20)

    weight_bytes = (w1.size + w2.size) * 4
    headroom = 2 << 20
    # in + out blocks double-buffered (4x block) + constant-index weights (2x).
    max_block_bytes = (vmem_budget - 2 * weight_bytes - headroom) // 4

    xf = x.reshape(N, C, HW)                             # lane-dense layout
    w1t = jnp.transpose(w1).astype(jnp.float32)          # (C, mip)
    w2t = jnp.transpose(w2).astype(jnp.float32)          # (mip, C)

    if force_two_pass or per_n_bytes > max_block_bytes:
        out = _channel_attn_two_pass(
            xf, w1t, w2t, N=N, C=C, HW=HW, mip=mip, itemsize=itemsize,
            target_block_bytes=target_block_bytes, vmem_budget=vmem_budget,
            weight_bytes=weight_bytes, headroom=headroom)
        return out.reshape(N, C, H, W)

    # ---- single-pass path ------------------------------------------------
    tn = max(1, min(N, min(target_block_bytes, max_block_bytes) // per_n_bytes))
    # Keep >=4 grid steps (>=2 per v7x TensorCore) when N allows, else >=2.
    min_steps = 4 if N >= 4 else (2 if N >= 2 else 1)
    tn = min(tn, max(1, N // min_steps))

    grid = (pl.cdiv(N, tn),)                             # ragged last block OK (rows independent)
    needed = 4 * tn * per_n_bytes + 2 * weight_bytes + headroom
    vmem_limit = int(min(vmem_budget, max(needed, 16 << 20)))

    out = pl.pallas_call(
        _channel_attn_kernel,
        out_shape=jax.ShapeDtypeStruct((N, C, HW), x.dtype),
        grid=grid,
        in_specs=[
            pl.BlockSpec((tn, C, HW), lambda n: (n, 0, 0)),    # x slab (lane dim = HW)
            pl.BlockSpec((C, mip), lambda n: (0, 0)),          # W1^T (full, resident)
            pl.BlockSpec((mip, C), lambda n: (0, 0)),          # W2^T (full, resident)
        ],
        out_specs=pl.BlockSpec((tn, C, HW), lambda n: (n, 0, 0)),
        compiler_params=pltpu.CompilerParams(
            dimension_semantics=("parallel",),
            vmem_limit_bytes=vmem_limit,
        ),
    )(xf, w1t, w2t)

    return out.reshape(N, C, H, W)


def _channel_attn_two_pass(xf, w1t, w2t, *, N, C, HW, mip, itemsize,
                           target_block_bytes, vmem_budget, weight_bytes, headroom):
    """Fallback when one (C, HW) sample slab exceeds the VMEM block budget."""
    max_block_bytes = (vmem_budget - 2 * weight_bytes - headroom) // 4
    thw = min(target_block_bytes, max(max_block_bytes, 128 * C * itemsize)) // (C * itemsize)
    thw = max(128, (thw // 128) * 128)
    hw_pad = pl.cdiv(HW, 128) * 128
    thw = min(thw, hw_pad)
    n_hw = pl.cdiv(HW, thw)

    block_bytes = C * thw * itemsize
    needed = 4 * block_bytes + 2 * weight_bytes + headroom
    vmem_limit = int(min(vmem_budget, max(needed, 16 << 20)))

    # Pass 1: tiled spatial sum -> mean -> MLP -> per-(n, c) gains (f32).
    gains = pl.pallas_call(
        functools.partial(_pool_mlp_kernel, total_hw=HW),
        out_shape=jax.ShapeDtypeStruct((N, 1, C), jnp.float32),
        grid=(N, n_hw),
        in_specs=[
            pl.BlockSpec((1, C, thw), lambda n, h: (n, 0, h)),
            pl.BlockSpec((C, mip), lambda n, h: (0, 0)),
            pl.BlockSpec((mip, C), lambda n, h: (0, 0)),
        ],
        out_specs=pl.BlockSpec((1, 1, C), lambda n, h: (n, 0, 0)),
        scratch_shapes=[pltpu.VMEM((1, C), jnp.float32)],
        compiler_params=pltpu.CompilerParams(
            dimension_semantics=("parallel", "arbitrary"),
            vmem_limit_bytes=vmem_limit,
        ),
    )(xf, w1t, w2t)

    # Pass 2: tiled broadcast-multiply.
    out = pl.pallas_call(
        _reweight_kernel,
        out_shape=jax.ShapeDtypeStruct((N, C, HW), xf.dtype),
        grid=(N, n_hw),
        in_specs=[
            pl.BlockSpec((1, C, thw), lambda n, h: (n, 0, h)),
            pl.BlockSpec((1, 1, C), lambda n, h: (n, 0, 0)),
        ],
        out_specs=pl.BlockSpec((1, C, thw), lambda n, h: (n, 0, h)),
        compiler_params=pltpu.CompilerParams(
            dimension_semantics=("parallel", "parallel"),
            vmem_limit_bytes=vmem_limit,
        ),
    )(xf, gains)
    return out


# ---------------------------------------------------------------------------
# Reference / test harness
# ---------------------------------------------------------------------------

def _spectral_normalize(w2d):
    """Emulate torch spectral_norm at its fixed point: W / sigma_max(W)."""
    return w2d / jnp.linalg.norm(w2d, ord=2)


def _reference(x, w1, w2):
    """Plain-JAX reference mirroring the PyTorch ChannelAttn forward (f32)."""
    xf = x.astype(jnp.float32)
    y = xf.mean(axis=(2, 3))                             # (N, C)
    y = jnp.maximum(y @ w1.T, 0.0)                       # (N, mip)
    y = jax.nn.sigmoid(y @ w2.T)                         # (N, C)
    return xf * y[:, :, None, None]


if __name__ == "__main__":
    N, C, H, W = 2, 16, 16, 16
    reduction = 4
    mip = C // reduction                                 # = 4

    key = jax.random.PRNGKey(0)
    k_x, k_w1, k_w2, k_x2 = jax.random.split(key, 4)
    x = jax.random.normal(k_x, (N, C, H, W), jnp.float32)

    # Deterministic synthetic weights (shapes from ChannelAttn.__init__), spectral-normed.
    w1 = _spectral_normalize(jax.random.normal(k_w1, (mip, C), jnp.float32) * 0.5)  # Linear(C, mip)
    w2 = _spectral_normalize(jax.random.normal(k_w2, (C, mip), jnp.float32) * 0.5)  # Linear(mip, C)

    ref = _reference(x, w1, w2)

    # 1) Single-pass f32 path.
    out = jax.block_until_ready(channel_attn_pallas(x, w1, w2))
    assert out.shape == (N, C, H, W)
    assert jnp.allclose(out, ref, atol=1e-5, rtol=1e-5), "f32 single-pass mismatch"

    # 2) bf16 I/O path (internal pooling/MLP in f32); looser tolerance for bf16 quantization.
    out_bf16 = jax.block_until_ready(channel_attn_pallas(x.astype(jnp.bfloat16), w1, w2))
    assert out_bf16.dtype == jnp.bfloat16
    assert jnp.allclose(out_bf16.astype(jnp.float32), ref, atol=5e-2, rtol=5e-2), \
        "bf16 single-pass mismatch"

    # 3) Two-pass fallback (forced) with a ragged spatial tiling (HW = 400, tile = 128).
    N2, H2, W2 = 3, 20, 20
    x2 = jax.random.normal(k_x2, (N2, C, H2, W2), jnp.float32)
    ref2 = _reference(x2, w1, w2)
    out2 = jax.block_until_ready(channel_attn_pallas(x2, w1, w2, force_two_pass=True))
    # Slightly looser atol: tiled-sum reassociation in the pooled mean.
    assert jnp.allclose(out2, ref2, atol=1e-4, rtol=1e-4), "two-pass fallback mismatch"

    print("KERNEL_OK")
</pallas_src>

<mosaic_0001>
module attributes {stable_mosaic.version = 11 : i64} {
  func.func @_channel_attn_kernel(%arg0: i32, %arg1: memref<1x16x256xf32, #tpu.memory_space<vmem>>, %arg2: memref<16x4xf32, #tpu.memory_space<vmem>>, %arg3: memref<4x16xf32, #tpu.memory_space<vmem>>, %arg4: memref<1x16x256xf32, #tpu.memory_space<vmem>>) attributes {dimension_semantics = [#tpu.dimension_semantics<parallel>], iteration_bounds = array<i64: 2>, scalar_prefetch = 0 : i64, scratch_operands = 0 : i64, tpu.core_type = #tpu.core_type<tc>, window_params = [{transform_indices = @transform_0, window_bounds = array<i64: 1, 16, 256>}, {pipeline_mode = #tpu.pipeline_mode<synchronous>, transform_indices = @transform_1, window_bounds = array<i64: 16, 4>}, {pipeline_mode = #tpu.pipeline_mode<synchronous>, transform_indices = @transform_2, window_bounds = array<i64: 4, 16>}, {transform_indices = @transform_3, window_bounds = array<i64: 1, 16, 256>}]} {
    %c0 = arith.constant 0 : index
    %c0_0 = arith.constant 0 : index
    %c0_1 = arith.constant 0 : index
    %0 = vector.load %arg1[%c0, %c0_0, %c0_1] : memref<1x16x256xf32, #tpu.memory_space<vmem>>, vector<1x16x256xf32>
    %cst = arith.constant dense<0.000000e+00> : vector<1x16xf32>
    %1 = vector.multi_reduction <add>, %0, %cst [2] : vector<1x16x256xf32> to vector<1x16xf32>
    %cst_2 = arith.constant 2.560000e+02 : f32
    %2 = vector.broadcast %cst_2 : f32 to vector<1x16xf32>
    %3 = arith.divf %1, %2 : vector<1x16xf32>
    %c0_3 = arith.constant 0 : index
    %c0_4 = arith.constant 0 : index
    %4 = vector.load %arg2[%c0_3, %c0_4] : memref<16x4xf32, #tpu.memory_space<vmem>>, vector<16x4xf32>
    %cst_5 = arith.constant dense<0.000000e+00> : vector<1x4xf32>
    %5 = tpu.matmul %3, %4, %cst_5 {dimension_numbers = #tpu.dot_dimension_numbers<[1], [0], [0], [1], [0, 0, 1, 1], [], []>} : vector<1x16xf32>, vector<16x4xf32>, vector<1x4xf32> -> vector<1x4xf32>
    %cst_6 = arith.constant 0.000000e+00 : f32
    %6 = vector.broadcast %cst_6 : f32 to vector<1x4xf32>
    %7 = arith.maximumf %5, %6 : vector<1x4xf32>
    %c0_7 = arith.constant 0 : index
    %c0_8 = arith.constant 0 : index
    %8 = vector.load %arg3[%c0_7, %c0_8] : memref<4x16xf32, #tpu.memory_space<vmem>>, vector<4x16xf32>
    %cst_9 = arith.constant dense<0.000000e+00> : vector<1x16xf32>
    %9 = tpu.matmul %7, %8, %cst_9 {dimension_numbers = #tpu.dot_dimension_numbers<[1], [0], [0], [1], [0, 0, 1, 1], [], []>} : vector<1x4xf32>, vector<4x16xf32>, vector<1x16xf32> -> vector<1x16xf32>
    %10 = arith.negf %9 : vector<1x16xf32>
    %11 = math.exp %10 : vector<1x16xf32>
    %cst_10 = arith.constant 1.000000e+00 : f32
    %12 = vector.broadcast %cst_10 : f32 to vector<1x16xf32>
    %13 = arith.addf %12, %11 : vector<1x16xf32>
    %14 = arith.divf %12, %13 : vector<1x16xf32>
    %15 = vector.shape_cast %14 : vector<1x16xf32> to vector<1x16x1xf32>
    %16 = vector.broadcast %15 : vector<1x16x1xf32> to vector<1x16x256xf32>
    %17 = arith.mulf %0, %16 : vector<1x16x256xf32>
    %c0_11 = arith.constant 0 : index
    %c0_12 = arith.constant 0 : index
    %c0_13 = arith.constant 0 : index
    %18 = vector.load %arg4[%c0_11, %c0_12, %c0_13] : memref<1x16x256xf32, #tpu.memory_space<vmem>>, vector<1x16x256xf32>
    tpu.vector_store %arg4[%c0_11, %c0_12, %c0_13], %17 {strides = array<i32>} : memref<1x16x256xf32, #tpu.memory_space<vmem>>, vector<1x16x256xf32>,
    return
  }
  func.func @transform_0(%arg0: i32) -> (i32, i32, i32) {
    %c0_i32 = arith.constant 0 : i32
    %c0_i32_0 = arith.constant 0 : i32
    %c0_i32_1 = arith.constant 0 : i32
    return %arg0, %c0_i32, %c0_i32_0 : i32, i32, i32
  }
  func.func @transform_1(%arg0: i32) -> (i32, i32) {
    %c0_i32 = arith.constant 0 : i32
    %c0_i32_0 = arith.constant 0 : i32
    %c0_i32_1 = arith.constant 0 : i32
    return %c0_i32, %c0_i32_0 : i32, i32
  }
  func.func @transform_2(%arg0: i32) -> (i32, i32) {
    %c0_i32 = arith.constant 0 : i32
    %c0_i32_0 = arith.constant 0 : i32
    %c0_i32_1 = arith.constant 0 : i32
    return %c0_i32, %c0_i32_0 : i32, i32
  }
  func.func @transform_3(%arg0: i32) -> (i32, i32, i32) {
    %c0_i32 = arith.constant 0 : i32
    %c0_i32_0 = arith.constant 0 : i32
    %c0_i32_1 = arith.constant 0 : i32
    return %arg0, %c0_i32, %c0_i32_0 : i32, i32, i32
  }
}

</mosaic_0001>

<bundles_post_ra>
// kernel: tpu_custom_call.1
= control target key start
LH: loop header
LB: loop body
LE: loop exit
PB: predicated region body
PF: predicated region fallthrough
CT: control target
= control target key end

     0   :  { %8 = vsyncpa [#allocation3], 0  ;;  %s762_s0 = inlined_call_operand.hbm [shape: f32[2,16,256], index: 0, kind: input, shape index: {}]   ;;  %s763_s1 = inlined_call_operand.vmem [shape: f32[16,4], index: 1, kind: input, shape index: {}]   ;;  %s764_s2 = inlined_call_operand.vmem [shape: f32[4,16], index: 2, kind: input, shape index: {}]   ;;  %s765_s3 = inlined_call_operand.hbm [shape: f32[2,16,256], index: 3, kind: output, shape index: {}]  }
   0x1   :  { %10 = vsyncpa [#allocation3 + $0x1], 0 }
   0x2   :  { %11 = vsyncpa [#allocation4], 0 }
   0x3   :  { %13 = vsyncpa [#allocation4 + $0x1], 0  ;;  %s606_s12 = smov 0   ;;  %s608_s13 = smov 0  }
   0x4   :  { %s610_s14 = smov 0   ;;  %s612_s15 = smov 0  }
   0x5 LB: > { %s627_s16 = sadd.s32 4294967295, %s579_s15   ;;  %s403_s17 = sadd.s32 4294967294, %s579_s15   ;;  %s579_s15 = sphi %s612_s15, %s775_s15   ;;  %s575_s14 = sphi %s610_s14, %s774_s14   ;;  %s571_s13 = sphi %s608_s13, %s773_s13   ;;  %s567_s12 = sphi %s606_s12, %s772_s12  }
   0x6   : > { %s631_s18 = sadd.s32 1, %s579_s15   ;;  %s26_s19 = sadd.s32 1, %s575_s14 }
   0x7   : > { %s23_s20 = ssub.s32 %s579_s15, %s631_s18  ;;  %p33_p0 = scmp.ne.s32.totalorder %s575_s14, %s571_s13 }
   0x8   : > { %p24_p1 = scmp.eq.s32.totalorder %s23_s20, 0  ;;  %p34_p2 = scmp.eq.s32.totalorder %s579_s15, 0 }
   0x9   : > { %p39_p3 = scmp.ne.s32.totalorder %s571_s13, %s567_s12  ;;  %p40_p4 = scmp.eq.s32.totalorder %s627_s16, 0 }
   0xa   : > { %s643_s21 = scalar_select %p24_p1, %s575_s14, %s26_s19  }
   0xb   : > { %p645_p5 = por %p34_p2, %p33_p0  ;;  %p649_p6 = por %p40_p4, %p39_p3 }
   0xc   : > { %p105_p7 = scmp.eq.s32.totalorder %s627_s16, 1  ;;  %p111_p8 = scmp.eq.s32.totalorder %s403_s17, 1 }
   0xd   : > { %p435_p10 = scmp.lt.s32.totalorder %s579_s15, 2  ;;  %s137_s26 = sand.u32 1, %s575_s14  }
   0xe   : > { %p656_p11 = por %p105_p7, %p33_p0  ;;  %p660_p12 = por %p111_p8, %p39_p3 }
   0xf   : > { %s421_s27 = sshll.u32 %s579_s15, 5  ;;  %s406_s28 = sshll.u32 %s137_s26, 5 }
  0x10   : > { %s146_s4 = scalar_lea.hbm %s762_s0, %s421_s27  ;;  %s141_s6 = scalar_lea.vmem [#allocation2], %s406_s28 }
  0x11   : > { %s147_s5 = sshll.u32 %s146_s4, 4  ;;  %s149_s7 = sshll.u32 %s141_s6, 4  ;;  %s148_s5 = int_to_ptr.hbm [resolvable:$true] %s147_s5  ;;  %s150_s7 = int_to_ptr.vmem [resolvable:$true] %s149_s7 }
  0x12   : > { %p671_p13 = pnand %p435_p10, %p645_p5  ;;  %p409_p0 = scmp.ge.s32.totalorder %s579_s15, 1 }
  0x13   : > { %p157_p1 = scmp.lt.s32.totalorder %s579_s15, 3  ;;  %s138_s9 = scalar_lea.sflag [#allocation3], %s137_s26 }
  0x14   : > { %s483_s10 = sshra.s32 %s148_s5, 4  ;;  %p487_p3 = pneg %p671_p13  ;;  %s484_s10 = int_to_ptr.hbm [resolvable:$true] %s483_s10 }
  0x15   : > { %s485_s11 = scalar_lea.hbm %s484_s10, 32  ;;  %s490_s20 = scalar_lea.hbm %s762_s0, 64 }
  0x16   : > { %p486_p2 = scmp.ne.s32.totalorder %s484_s10, %s485_s11  ;;  %p491_p5 = scmp.lt.s32.totalorder %s484_s10, %s762_s0 }
  0x17   : > { %p492_p8 = scmp.lt.s32.totalorder %s490_s20, %s485_s11 }
  0x18   : > { %p488_p4 = pnand %p487_p3, %p486_p2 }
  0x19   : > { %p493_p10 = por %p492_p8, %p491_p5 }
  0x1a   : > { %p489_p7 = pneg %p488_p4 }
  0x1c   : > { %p494_p9 = pnand %p493_p10, %p489_p7 }
  0x1e   : > { %497 = shalt.err (!%p494_p9)
}
  0x1f   : > { %s581_s26 = smov 256   ;;  %s582_s28 = smov 16  }
  0x20   : > { %430 = dma.hbm_to_vmem [thread:$0]  (!%p671_p13), %s148_s5, 512, %s150_s7, %s138_s9, %s581_s26, %s581_s26, %s582_s28  }
  0x21   : > { %p158_p2 = pnand %p409_p0, %p157_p1 }
  0x22   : > { %s692_s29 = sand.u32 (!%p158_p2), 1, %s571_s13  }
  0x23   : > { %161 = sbr.rel (%p158_p2) target bundleno = 595 (0x253), region = 32  ;;  %s410_s30 = sshll.u32 (!%p158_p2), %s692_s29, 5 }
  0x24   : > { %s164_s4 = scalar_lea.sflag (!%p158_p2), [#allocation3], %s692_s29  ;;  %s167_s6 = scalar_lea.vmem (!%p158_p2), [#allocation2], %s410_s30 }
  0x28   : > { %558 = dma.done.wait (%p649_p6), %s164_s4, 512  }
  0x29   : > { %560 = vsyncadd (%p649_p6), %s164_s4, 4294966784  ;;  %v702_v0 = vld [vmem:[%s167_s6] sm:$0xff]  ;;  %v704_v1 = vld [vmem:[%s167_s6 + $0x8] sm:$0xff]  ;;  %v583_v7 = vmov 256.0   ;;  %v214_v15 = vlaneseq  ;;  %vm219_vm1 = vcmask 130112   ;;  %vm221_vm2 = vcmask 130048  }
  0x2a   : > { %v195_v2 = vadd.f32 %v704_v1, %v702_v0  ;;  %v708_v3 = vld [vmem:[%s167_s6 + $0x10] sm:$0xff]  ;;  %v710_v4 = vld [vmem:[%s167_s6 + $0x18] sm:$0xff]  ;;  %v211_v6 = vld [vmem:[%s763_s1 + $0x8] sm:$0xff]  ;;  %477 = vrcp.f32 %v583_v7  ;;  %vm250_vm3 = vcmask 1043456   ;;  %vm246_vm4 = vcmask 31744   ;;  %s190_s11 = scalar_lea.vmem [#allocation5], %s410_s30 }
  0x2b   : > { %v198_v5 = vadd.f32 %v710_v4, %v708_v3  ;;  %238 = vmatpush.msra.mxu0 %v211_v6  ;;  %v210_v8 = vld [vmem:[%s763_s1] sm:$0xff]  ;;  %v215_v17 = vand.u32 127, %v214_v15  ;;  %v295_v28 = vshrl.u32 %v214_v15, 7  ;;  %s422_s17 = sshll.u32 %s627_s16, 5  ;;  %s327_s27 = sshll.u32 %s190_s11, 4  ;;  %s328_s27 = int_to_ptr.vmem [resolvable:$true] %s327_s27 }
  0x2c   : > { %196 = vadd.xlane.f32.xlu0 %v195_v2  ;;  %v245_v25 = vld [vmem:[%s764_s2] sm:$0xf]  ;;  %s326_s22 = scalar_lea.hbm %s765_s3, %s422_s17  ;;  %s315_s28 = scalar_lea.sflag [#allocation4], %s692_s29 }
  0x2d   : > { %239 = vmatpush.msra.mxu0 %v210_v8  ;;  %v217_v19 = vadd.s32 4294967288, %v215_v17  ;;  %413 = vmatpush.msk.msra.mxu1 %vm250_vm3, %v245_v25  ;;  %v302_v29 = vadd.s32 8, %v295_v28  ;;  %s329_s26 = sshll.u32 %s326_s22, 4  ;;  %s533_s5 = scalar_lea.hbm %s765_s3, 64  ;;  %s330_s26 = int_to_ptr.hbm [resolvable:$true] %s329_s26 }
  0x2e   : > { %474 = vset.pattern.permute.xlu1 %v295_v28  ;;  %s527_s30 = sshra.s32 %s330_s26, 4  ;;  %s528_s30 = int_to_ptr.hbm [resolvable:$true] %s527_s30 }
  0x2f   : > { %476 = vset.pattern.permute.xlu0 %v302_v29  ;;  %s529_s16 = scalar_lea.hbm %s528_s30, 32  ;;  %p534_p0 = scmp.lt.s32.totalorder %s528_s30, %s765_s3 }
  0x30   : > { %v478_v9 = vpop.eup %477  ;;  %p530_p6 = scmp.ne.s32.totalorder %s528_s30, %s529_s16  ;;  %p535_p1 = scmp.lt.s32.totalorder %s533_s5, %s529_s16 }
  0x31   : > { %v202_v10 = vmul.f32 256.0, %v478_v9  ;;  %vm206_vm0 = vweird.f32 %v478_v9 }
  0x32   : > { %p531_p9 = pnand %p530_p6, %p656_p11  ;;  %p536_p3 = por %p535_p1, %p534_p0 }
  0x33   : > { %v203_v11 = vsub.f32 1.0, %v202_v10 }
  0x34   : > { %199 = vadd.xlane.f32.xlu0 %v198_v5  ;;  %p532_p13 = pneg %p531_p9 }
  0x35   : > { %v204_v12 = vmul.f32 %v478_v9, %v203_v11 }
  0x36   : > { %p537_p4 = pnand %p536_p3, %p532_p13 }
  0x37   : > { %v205_v13 = vadd.f32 %v478_v9, %v204_v12 }
  0x39   : > { %v207_v16 = vsel %vm206_vm0, %v478_v9, %v205_v13 }
  0x9f   : > { %v197_v14 = vpop.xlane.xlu0 %196 }
  0xa0   : > { %v208_v18 = vmul.f32 %v207_v16, %v197_v14 }
  0xa2   : > { %v216_v22 = vperm.slane %v208_v18, %v215_v17 }
  0xa7   : > { %v200_v20 = vpop.xlane.xlu0 %199 }
  0xa8   : > { %v209_v21 = vmul.f32 %v207_v16, %v200_v20 }
  0xaa   : > { %v218_v23 = vperm.slane %v209_v21, %v217_v19 }
  0xac   : > { %v220_v24 = vsel %vm219_vm1, %v218_v23, %v216_v22 }
  0xad   : > { %412 = vmatmul.msk.f32.vlgmr.msra.gmra.mxu0 %vm221_vm2, %v220_v24 }
 0x12a   : > { %v241_v26 = vpop.f32.mrf.mxu0 }
 0x12b   : > { %v244_v27 = vmax.f32 %v241_v26, 0.0 }
 0x12d   : > { %414 = vmatmul.msk.f32.vlgmr.msra.gmra.mxu1 %vm246_vm4, %v244_v27 }
 0x1aa   : > { %v271_v30 = vpop.f32.mrf.mxu1 }
 0x1ab   : > { %v415_v31 = vmul.f32 -1.442695, %v271_v30 }
 0x1ad   : > { %479 = vpow2.f32 %v415_v31 }
 0x1b3   : > { %v480_v32 = vpop.eup %479 }
 0x1b4   : > { %v277_v33 = vadd.f32 1.0, %v480_v32 }
 0x1b6   : > { %481 = vrcp.f32 %v277_v33  ;;  %v289_v37 = vand.u32 2147483648, %v277_v33  ;;  %v287_v39 = vand.u32 2147483647, %v277_v33  ;;  %vm283_vm6 = vweird.f32 %v277_v33 }
 0x1b8   : > { %v290_v41 = vor.u32 1.1754944e-38, %v289_v37  ;;  %vm288_vm8 = vcmp.eq.f32.partialorder %v287_v39, 8.507059e+37 }
 0x1bc   : > { %v482_v34 = vpop.eup %481 }
 0x1bd   : > { %v279_v35 = vmul.f32 %v482_v34, %v277_v33  ;;  %vm284_vm5 = vweird.f32 %v482_v34 }
 0x1be   : > { %vm285_vm7 = vmor %vm283_vm6, %vm284_vm5 }
 0x1bf   : > { %v280_v36 = vsub.f32 1.0, %v279_v35 }
 0x1c1   : > { %v281_v38 = vmul.f32 %v482_v34, %v280_v36 }
 0x1c3   : > { %v282_v40 = vadd.f32 %v482_v34, %v281_v38 }
 0x1c5   : > { %v286_v42 = vsel %vm285_vm7, %v482_v34, %v282_v40 }
 0x1c6   : > { %v291_v43 = vsel %vm288_vm8, %v290_v41, %v286_v42 }
 0x1c7   : > { %v293_v44 = vperm.slane %v291_v43, 0 }
 0x1c9   : > { %298 = vperm.xlu1 %474, %v293_v44  }
 0x1d1   : > { %475 = vset.pattern.permute.xlu1 %v302_v29 }
 0x1d9   : > { %304 = vperm.xlu1 %475, %v293_v44  }
 0x23b   : > { %v299_v45 = vpop.permute.xlu1 %298 }
 0x23c   : > { %v306_v46 = vmul.f32 %v299_v45, %v702_v0  ;;  %v307_v47 = vmul.f32 %v299_v45, %v704_v1 }
 0x23e   : > { %310 = vst [vmem:[%s190_s11] sm:$0xff] %v306_v46 }
 0x23f   : > { %311 = vst [vmem:[%s190_s11 + $0x8] sm:$0xff] %v307_v47 }
 0x24b   : > { %v305_v48 = vpop.permute.xlu1 %304 }
 0x24c   : > { %v308_v49 = vmul.f32 %v305_v48, %v708_v3  ;;  %v309_v50 = vmul.f32 %v305_v48, %v710_v4 }
 0x24e   : > { %312 = vst [vmem:[%s190_s11 + $0x10] sm:$0xff] %v308_v49 }
 0x24f   : > { %313 = vst [vmem:[%s190_s11 + $0x18] sm:$0xff] %v309_v50 }
 0x250   : > { %540 = shalt.err (!%p537_p4)
}
 0x251   : > { %s584_s29 = smov 256   ;;  %s585_s8 = smov 16  }
 0x252   : > { %425 = dma.vmem_to_hbm [thread:$0]  (%p656_p11), %s328_s27, 512, %s330_s26, %s315_s28, %s584_s29, %s584_s29, %s585_s8  }
 0x253 PF: > { %s344_s9 = sand.u32 1, %s567_s12   ;;  %p771_p7 = scmp.ge.s32.totalorder %s579_s15, 2 }
 0x254   : > { %s345_s10 = scalar_lea.sflag [#allocation4], %s344_s9 }
 0x255   : > { %p432_p5 = pnand %p771_p7, %p660_p12 }
 0x257   : > { %p433_p8 = pneg %p432_p5 }
 0x259   : > { %562 = dma.done.wait (%p433_p8), %s345_s10, 512  }
 0x25a   : > { %564 = vsyncadd (%p433_p8), %s345_s10, 4294966784  ;;  %p16_p10 = scmp.ge.s32.totalorder %s631_s18, 4   ;;  %s772_s12 = smov %s571_s13 }
 0x25b   : > { %s773_s13 = smov %s575_s14  ;;  %s774_s14 = smov %s643_s21 }
 0x25c   : > { %s775_s15 = smov %s631_s18  ;;  %18 = sbr.rel (!%p16_p10) target bundleno = 5 (0x5), region = 77 }
 0x261   :  { %351 = vsyncpa [#allocation3], 1 }
 0x262   :  { %353 = vsyncpa [#allocation3 + $0x1], 1 }
 0x263   :  { %354 = vsyncpa [#allocation4], 1 }
 0x264   :  { %356 = vsyncpa [#allocation4 + $0x1], 1 }

</bundles_post_ra>
